<compile_context>
chip_gen: v7x
topology: tpu7x:2x2x1
jax: 0.10.0
libtpu: 0.0.40
codegen_flags: <defaults>
</compile_context>

<pallas_src>
import numpy as np
import jax
import jax.numpy as jnp
from jax.experimental import pallas as pl
from jax.experimental.pallas import tpu as pltpu


def make_positional_encoding(d_model: int, max_seq_length: int) -> jnp.ndarray:
    """Deterministic sinusoidal table, identical math to the PyTorch __init__."""
    position = np.arange(0, max_seq_length, dtype=np.float32)[:, None]          # (L, 1)
    div_term = np.exp(np.arange(0, d_model, 2, dtype=np.float32)
                      * (-np.log(10000.0) / d_model))                           # (D/2,)
    pe = np.zeros((max_seq_length, d_model), dtype=np.float32)
    pe[:, 0::2] = np.sin(position * div_term)
    pe[:, 1::2] = np.cos(position * div_term)
    return jnp.asarray(pe)                                                       # (L, D)


def _add_pe_kernel(x_ref, pe_ref, o_ref):
    # Pure VPU elementwise add; pe_ref broadcasts over the batch axis.
    o_ref[...] = x_ref[...] + pe_ref[...]


_DEF_TILE_BYTES = 2 * 1024 * 1024   # ~12 MiB of pipelined VMEM < v5e's 16 MiB scoped default


def _pick_seq_tile(S: int, D: int, itemsize: int, target_bytes: int) -> int:
    """Largest multiple-of-8 divisor of S whose (ts, D) tile is <= target_bytes."""
    if S % 8 != 0:
        return S                                   # full-extent block (== array dim, always legal)
    max_rows = (target_bytes // max(1, D * itemsize)) // 8 * 8
    if max_rows >= S:
        return S
    for cand in range(max(max_rows, 8), 7, -8):
        if S % cand == 0:
            return cand
    return 8


def _pick_lane_tile(N: int, B: int, itemsize: int, target_bytes: int) -> int:
    """Largest multiple-of-128 divisor of N whose (B, tc) tile is <= target_bytes."""
    if N % 128 != 0:
        return N                                   # full-extent block
    max_cols = (target_bytes // max(1, B * itemsize)) // 128 * 128
    if max_cols >= N:
        return N
    for cand in range(max(max_cols, 128), 127, -128):
        if N % cand == 0:
            return cand
    return 128


def positional_embedding(x: jnp.ndarray,
                         pe: jnp.ndarray,
                         *,
                         seq_tile=None,
                         target_tile_bytes: int = _DEF_TILE_BYTES) -> jnp.ndarray:
    """x: (B, S, D); pe: (max_seq_length, D).  Returns x + pe[:S] in x.dtype."""
    B, S, D = x.shape
    L, Dp = pe.shape
    assert Dp == D and S <= L, "pe table incompatible with x"
    pe = pe.astype(x.dtype)                        # avoid mixed-dtype add / implicit downcast at store
    itemsize = jnp.dtype(x.dtype).itemsize

    if D % 128 == 0:
        # ---- lane-aligned path: keep (B, S, D), tile the sequence dimension ----
        ts = seq_tile if seq_tile is not None else _pick_seq_tile(S, D, itemsize, target_tile_bytes)
        assert S % ts == 0 and (ts % 8 == 0 or ts == S), f"bad seq tile {ts} for S={S}"
        n_s = S // ts

        if ts % 8 == 0:
            pe_arr = pe                            # window into the full table via the index_map
        else:
            pe_arr = pe[:S]                        # ts == S and S % 8 != 0: block must equal array dims

        return pl.pallas_call(
            _add_pe_kernel,
            out_shape=jax.ShapeDtypeStruct((B, S, D), x.dtype),
            grid_spec=pltpu.PrefetchScalarGridSpec(
                num_scalar_prefetch=0,
                grid=(n_s, B),                     # batch innermost: pe tile DMA'd once per s-tile
                in_specs=[
                    pl.BlockSpec((1, ts, D), lambda s, b: (b, s, 0)),
                    pl.BlockSpec((ts, D), lambda s, b: (s, 0)),   # independent of b -> no re-fetch
                ],
                out_specs=pl.BlockSpec((1, ts, D), lambda s, b: (b, s, 0)),
            ),
            compiler_params=pltpu.CompilerParams(
                dimension_semantics=("parallel", "arbitrary"),    # s-tiles shard across v7x TCs
            ),
            input_output_aliases={0: 0},           # out reuses x's HBM buffer
        )(x, pe_arr)

    # ---- lane-dense fallback (D not a multiple of 128, e.g. the D=32 demo) ----
    # Flatten (S, D) per batch row so every store is a full >=128-lane vst.
    N = S * D
    x2 = x.reshape(B, N)                           # contiguous reshape, no data movement
    pe2 = pe[:S].reshape(1, N)                     # tiny (S*D) copy; only on this path
    tc = _pick_lane_tile(N, B, itemsize, target_tile_bytes)
    assert N % tc == 0 and (tc % 128 == 0 or tc == N)
    n_c = N // tc

    out2 = pl.pallas_call(
        _add_pe_kernel,
        out_shape=jax.ShapeDtypeStruct((B, N), x.dtype),
        grid_spec=pltpu.PrefetchScalarGridSpec(
            num_scalar_prefetch=0,
            grid=(n_c,),
            in_specs=[
                pl.BlockSpec((B, tc), lambda c: (0, c)),          # all batches per chunk
                pl.BlockSpec((1, tc), lambda c: (0, c)),          # pe chunk fetched once per chunk
            ],
            out_specs=pl.BlockSpec((B, tc), lambda c: (0, c)),
        ),
        compiler_params=pltpu.CompilerParams(
            dimension_semantics=("parallel",),
        ),
        input_output_aliases={0: 0},
    )(x2, pe2)
    return out2.reshape(B, S, D)


if __name__ == "__main__":
    key = jax.random.PRNGKey(0)
    k1, k2 = jax.random.split(key)

    # Demo shapes implied by the module: batch=2, seq=8, d_model=32, max_seq_length=16.
    B, S, D, L = 2, 8, 32, 16
    x = jax.random.normal(k1, (B, S, D), dtype=jnp.float32)
    pe = make_positional_encoding(D, L)
    ref = x + pe[None, :S, :]                      # reference BEFORE the (aliased) kernel call
    out = jax.block_until_ready(positional_embedding(x, pe))
    np.testing.assert_allclose(np.asarray(out), np.asarray(ref), rtol=1e-6, atol=1e-6)

    # Second small check exercising the lane-aligned tiled path (D % 128 == 0, 2 seq tiles).
    B2, S2, D2, L2 = 2, 16, 128, 32
    x_b = jax.random.normal(k2, (B2, S2, D2), dtype=jnp.float32)
    pe_b = make_positional_encoding(D2, L2)
    ref_b = x_b + pe_b[None, :S2, :]
    out_b = jax.block_until_ready(positional_embedding(x_b, pe_b, seq_tile=8))
    np.testing.assert_allclose(np.asarray(out_b), np.asarray(ref_b), rtol=1e-6, atol=1e-6)

    print("KERNEL_OK")
</pallas_src>

<mosaic_0001>
module attributes {stable_mosaic.version = 11 : i64} {
  func.func @_add_pe_kernel(%arg0: i32, %arg1: memref<2x256xf32, #tpu.memory_space<vmem>>, %arg2: memref<1x256xf32, #tpu.memory_space<vmem>>, %arg3: memref<2x256xf32, #tpu.memory_space<vmem>>) attributes {dimension_semantics = [#tpu.dimension_semantics<parallel>], iteration_bounds = array<i64: 1>, scalar_prefetch = 0 : i64, scratch_operands = 0 : i64, tpu.core_type = #tpu.core_type<tc>, window_params = [{transform_indices = @transform_0, window_bounds = array<i64: 2, 256>}, {transform_indices = @transform_1, window_bounds = array<i64: 1, 256>}, {transform_indices = @transform_2, window_bounds = array<i64: 2, 256>}]} {
    %c0 = arith.constant 0 : index
    %c0_0 = arith.constant 0 : index
    %0 = vector.load %arg1[%c0, %c0_0] : memref<2x256xf32, #tpu.memory_space<vmem>>, vector<2x256xf32>
    %c0_1 = arith.constant 0 : index
    %c0_2 = arith.constant 0 : index
    %1 = vector.load %arg2[%c0_1, %c0_2] : memref<1x256xf32, #tpu.memory_space<vmem>>, vector<1x256xf32>
    %2 = vector.broadcast %1 : vector<1x256xf32> to vector<2x256xf32>
    %3 = arith.addf %0, %2 : vector<2x256xf32>
    %c0_3 = arith.constant 0 : index
    %c0_4 = arith.constant 0 : index
    %4 = vector.load %arg3[%c0_3, %c0_4] : memref<2x256xf32, #tpu.memory_space<vmem>>, vector<2x256xf32>
    tpu.vector_store %arg3[%c0_3, %c0_4], %3 {strides = array<i32>} : memref<2x256xf32, #tpu.memory_space<vmem>>, vector<2x256xf32>,
    return
  }
  func.func @transform_0(%arg0: i32) -> (i32, i32) {
    %c0_i32 = arith.constant 0 : i32
    %c0_i32_0 = arith.constant 0 : i32
    return %c0_i32, %arg0 : i32, i32
  }
  func.func @transform_1(%arg0: i32) -> (i32, i32) {
    %c0_i32 = arith.constant 0 : i32
    %c0_i32_0 = arith.constant 0 : i32
    return %c0_i32, %arg0 : i32, i32
  }
  func.func @transform_2(%arg0: i32) -> (i32, i32) {
    %c0_i32 = arith.constant 0 : i32
    %c0_i32_0 = arith.constant 0 : i32
    return %c0_i32, %arg0 : i32, i32
  }
}

</mosaic_0001>

<bundles_post_ra>
// kernel: tpu_custom_call.1
= control target key start
LH: loop header
LB: loop body
LE: loop exit
PB: predicated region body
PF: predicated region fallthrough
CT: control target
= control target key end

     0   :  { %7 = vsyncpa [#allocation3], 0  ;;  %s157_s0 = inlined_call_operand.hbm [shape: f32[2,256], index: 0, kind: input, shape index: {}, may-alias: {0,2}]   ;;  %s158_s1 = inlined_call_operand.vmem [shape: f32[1,256], index: 1, kind: input, shape index: {}]   ;;  %s159_s2 = inlined_call_operand.hbm [shape: f32[2,256], index: 2, kind: output, shape index: {}, may-alias: {0,2}]  }
   0x1   :  { %8 = vsyncpa [#allocation4], 0  ;;  %s112_s9 = smov [#allocation2]   ;;  %s64_s13 = scalar_lea.hbm %s157_s0, 64 }
   0x2   :  { %s15_s10 = sshll.u32 %s112_s9, 4  ;;  %p65_p0 = scmp.ne.s32.totalorder %s157_s0, %s64_s13  ;;  %s16_s10 = int_to_ptr.vmem [resolvable:$true] %s15_s10 }
   0x3   :  { %p68_p1 = scmp.lt.u32.totalorder %s64_s13, %s157_s0 }
   0x5   :  { %p70_p2 = pnand %p68_p1, %p65_p0 }
   0x7   :  { %73 = shalt.err (!%p70_p2)
}
   0x8   :  { %s74_s18 = scalar_lea.vmem %s16_s10, 64  ;;  %p79_p4 = scmp.lt.s32.totalorder %s16_s10, %s16_s10 }
   0x9   :  { %p75_p3 = scmp.ne.s32.totalorder %s16_s10, %s74_s18  ;;  %p80_p5 = scmp.lt.s32.totalorder %s74_s18, %s74_s18 }
   0xb   :  { %p81_p6 = por %p80_p5, %p79_p4 }
   0xd   :  { %p82_p7 = pnand %p81_p6, %p75_p3 }
   0xf   :  { %85 = shalt.err (!%p82_p7)
}
  0x10   :  { %18 = dma.hbm_to_vmem [thread:$0]  %s157_s0, 64, %s16_s10, [#allocation3]  }
  0x11   :  { %108 = dma.done.wait [#allocation3], 64  }
  0x12   :  { %109 = vsyncadd [#allocation3], 4294967232  ;;  %v27_v0 = vlaneseq  ;;  %v113_v1 = vmov 1983009808   ;;  %v25_v7 = vld [vmem:[%s158_s1] sm:$0x3] }
  0x13   :  { %v37_v2 = vunpack.c.l.s4 %v113_v1  ;;  %v24_v12 = vld [vmem:[#allocation2] sm:$0xf]  ;;  %s114_s23 = smov [#allocation5]  }
  0x14   :  { %v28_v3 = vshrl.u32 %v27_v0, 7  ;;  %s52_s0 = sshll.u32 %s114_s23, 4  ;;  %s53_s0 = int_to_ptr.vmem [resolvable:$true] %s52_s0 }
  0x15   :  { %v38_v6 = vunpack.c.0.s8 %v37_v2  ;;  %s86_s24 = scalar_lea.vmem %s53_s0, 64  ;;  %p91_p9 = scmp.lt.s32.totalorder %s53_s0, %s53_s0 }
  0x16   :  { %v29_v4 = vsub.s32 0, %v28_v3  ;;  %v33_v5 = vsub.s32 1, %v28_v3  ;;  %p87_p8 = scmp.ne.s32.totalorder %s53_s0, %s86_s24  ;;  %p92_p10 = scmp.lt.s32.totalorder %s86_s24, %s86_s24 }
  0x17   :  { %v41_v10 = vsub.s32 %v38_v6, %v28_v3 }
  0x18   :  { %v30_v8 = vrot.slane %v25_v7, %v29_v4  ;;  %v34_v9 = vrot.slane %v25_v7, %v33_v5  ;;  %p93_p11 = por %p92_p10, %p91_p9 }
  0x1a   :  { %v35_v11 = vcombine.low %v30_v8, %v34_v9  ;;  %p94_p12 = pnand %p93_p11, %p87_p8 }
  0x1c   :  { %v42_v13 = vrot.slane %v35_v11, %v41_v10 }
  0x1e   :  { %v44_v14 = vadd.f32 %v42_v13, %v24_v12 }
  0x20   :  { %45 = vst [vmem:[#allocation5] sm:$0xf] %v44_v14 }
  0x21   :  { %97 = shalt.err (!%p94_p12)
}
  0x22   :  { %s98_s26 = scalar_lea.hbm %s159_s2, 64 }
  0x23   :  { %p99_p13 = scmp.ne.s32.totalorder %s159_s2, %s98_s26  ;;  %p102_p0 = scmp.lt.u32.totalorder %s98_s26, %s159_s2 }
  0x25   :  { %p104_p1 = pnand %p102_p0, %p99_p13 }
  0x27   :  { %107 = shalt.err (!%p104_p1)
}
  0x28   :  { %55 = dma.vmem_to_hbm [thread:$0]  %s53_s0, 64, %s159_s2, [#allocation4]  }
  0x29   :  { %110 = dma.done.wait [#allocation4], 64  }
  0x2a   :  { %111 = vsyncadd [#allocation4], 4294967232 }
  0x2b   :  { %59 = vsyncpa [#allocation3], 1 }
  0x2c   :  { %60 = vsyncpa [#allocation4], 1 }

</bundles_post_ra>
